<compile_context>
chip_gen: v7x
topology: tpu7x:2x2x1
jax: 0.10.0
libtpu: 0.0.40
codegen_flags: <defaults>
</compile_context>

<pallas_src>
import jax
import jax.numpy as jnp
from jax.experimental import pallas as pl
from jax.experimental.pallas import tpu as pltpu


def _pick_thw(hw, bytes_per_lane, step_budget=4 << 20):
    """HW tile (lane) width per grid step.

    Multiple of 128, capped so the per-step blocks + temporaries stay a few
    MiB, and >= 2 grid steps whenever HW allows.  Tiles that do not divide HW
    are fine (cdiv grid, clipped writeback); heads smaller than two 128-lane
    tiles use a single full-extent block (e.g. the 13x13 head).
    """
    if hw < 256:
        return hw
    cap = step_budget // max(bytes_per_lane, 1)
    thw = min(1024, cap, hw // 2)
    return max(128, (thw // 128) * 128)


def _decode_kernel(mul_ref, wh_ref, add_ref, pred_ref, out_ref):
    # mul_ref : VMEM (A, attrs, 1)       [stride_w, stride_h, a_w, a_h, 1, ...]
    # wh_ref  : VMEM (attrs, 1)          1.0 on rows 2,3 (w/h), else 0.0
    # add_ref : VMEM (attrs, THW)        rows 0/1 = pre-scaled grid offsets
    # pred_ref: VMEM (bs, A, attrs, THW) raw network output tile
    # out_ref : VMEM (bs, A, THW, attrs) decoded, attrs-last tile
    p = pred_ref[...].astype(jnp.float32)

    # One EUP transcendental per element: sigmoid(p) = e / (1 + e), e = exp(p).
    # approx reciprocal keeps the EUP cost to a single cheap vrcp push; one
    # Newton step (VPU-only, free in this memory-bound kernel) restores full
    # f32 accuracy.  Clamp p > 30 so inf/(1+inf) never yields NaN.
    e = jnp.exp(p)
    d = 1.0 + e
    inv = pl.reciprocal(d, approx=True)
    inv = inv * (2.0 - d * inv)                       # Newton refinement (VPU)
    sig = jnp.where(p > 30.0, 1.0, e * inv)

    is_wh = (wh_ref[...] != 0.0)[None, None]          # (1, 1, attrs, 1)
    val = jnp.where(is_wh, e, sig)                    # exp for w/h, sigmoid else
    dec = val * mul_ref[...][None] + add_ref[...][None, None]

    # Fused transpose to the PyTorch attrs-last layout (XLU work only); avoids
    # a separate XLA transpose that would re-read/re-write the whole output.
    out_ref[...] = jnp.swapaxes(dec, 2, 3).astype(out_ref.dtype)


def make_yolo_decode(anchors, num_classes, img_size, bs, in_h, in_w,
                     out_dtype=jnp.float32):
    num_anchors = len(anchors)
    bbox_attrs = 5 + num_classes
    stride_h = img_size[0] / in_h                     # static Python floats
    stride_w = img_size[1] / in_w
    HW = in_h * in_w

    # ~bytes touched per output lane per step: input(4) + output(4) + f32 temps.
    bytes_per_lane = bs * num_anchors * bbox_attrs * 16
    THW = _pick_thw(HW, bytes_per_lane)
    n_hw = pl.cdiv(HW, THW)

    # --- precomputed constant tables (built once at trace time) -------------
    # Per-(anchor, row) multiplier.  Raw anchors are used directly since
    # exp(t) * (a / stride) * stride == exp(t) * a.
    aw = jnp.array([a[0] for a in anchors], jnp.float32)
    ah = jnp.array([a[1] for a in anchors], jnp.float32)
    mul = jnp.ones((num_anchors, bbox_attrs), jnp.float32)
    mul = mul.at[:, 0].set(stride_w).at[:, 1].set(stride_h)
    mul = mul.at[:, 2].set(aw).at[:, 3].set(ah)
    mul = mul[:, :, None]                                         # (A, attrs, 1)

    # w/h row mask (rows 2, 3 take exp, all other rows take sigmoid).
    wh = jnp.zeros((bbox_attrs, 1), jnp.float32).at[2:4, 0].set(1.0)

    # Zero-padded additive grid slab: rows 0/1 = pre-scaled gx, gy (exact
    # integer div/mod — works for non-power-of-two widths like 13/26/52).
    col = jnp.arange(HW, dtype=jnp.int32)
    gx = (col % in_w).astype(jnp.float32) * stride_w
    gy = (col // in_w).astype(jnp.float32) * stride_h
    add = jnp.zeros((bbox_attrs, HW), jnp.float32).at[0].set(gx).at[1].set(gy)

    decode = pl.pallas_call(
        _decode_kernel,
        out_shape=jax.ShapeDtypeStruct((bs, num_anchors, HW, bbox_attrs),
                                       out_dtype),
        grid=(n_hw,),
        in_specs=[
            # resident (constant block index -> no re-DMA per step)
            pl.BlockSpec((num_anchors, bbox_attrs, 1), lambda j: (0, 0, 0)),
            pl.BlockSpec((bbox_attrs, 1), lambda j: (0, 0)),
            # follows the HW tile
            pl.BlockSpec((bbox_attrs, THW), lambda j: (0, j)),
            # whole batch + all anchors per HW tile
            # (pipeline_mode=pl.Buffered(3) can be swept here if DMA is still
            #  exposed on a trace)
            pl.BlockSpec((bs, num_anchors, bbox_attrs, THW),
                         lambda j: (0, 0, 0, j)),
        ],
        out_specs=pl.BlockSpec((bs, num_anchors, THW, bbox_attrs),
                               lambda j: (0, 0, j, 0)),
        compiler_params=pltpu.CompilerParams(
            dimension_semantics=("parallel",),
            vmem_limit_bytes=32 * 1024 * 1024),
    )

    @jax.jit
    def forward(x):
        # x: (bs, num_anchors*bbox_attrs, in_h, in_w) -- NCHW, like PyTorch.
        # Free reshape; dtype kept as-is (bf16 input halves the read DMA,
        # the kernel upcasts to f32 internally).
        pred = x.reshape(bs, num_anchors, bbox_attrs, HW)
        out = decode(mul, wh, add, pred)              # (bs, A, HW, attrs)
        # Contiguous (free) reshape to the PyTorch output layout.
        return out.reshape(bs, num_anchors * HW, bbox_attrs)

    return forward


def yolo_decode_reference(x, anchors, num_classes, img_size):
    """Pure-JAX reference mirroring the PyTorch targets=None branch."""
    bs, _, in_h, in_w = x.shape
    num_anchors = len(anchors)
    stride_h = img_size[0] / in_h
    stride_w = img_size[1] / in_w
    bbox_attrs = 5 + num_classes

    pred = x.astype(jnp.float32).reshape(bs, num_anchors, bbox_attrs, in_h, in_w)
    pred = jnp.transpose(pred, (0, 1, 3, 4, 2))           # (bs, A, H, W, attrs)

    sx = jax.nn.sigmoid(pred[..., 0])
    sy = jax.nn.sigmoid(pred[..., 1])
    w = pred[..., 2]
    h = pred[..., 3]
    conf = jax.nn.sigmoid(pred[..., 4])
    pcls = jax.nn.sigmoid(pred[..., 5:])

    grid_x = jnp.arange(in_w, dtype=jnp.float32)[None, :].repeat(in_h, 0)
    grid_y = jnp.arange(in_h, dtype=jnp.float32)[:, None].repeat(in_w, 1)
    grid_x = jnp.broadcast_to(grid_x, sx.shape)
    grid_y = jnp.broadcast_to(grid_y, sy.shape)

    sa = jnp.array([[aw / stride_w, ah / stride_h] for aw, ah in anchors],
                   dtype=jnp.float32)
    a_w = sa[:, 0][None, :, None, None]
    a_h = sa[:, 1][None, :, None, None]

    bx = (sx + grid_x) * stride_w
    by = (sy + grid_y) * stride_h
    bw = jnp.exp(w) * a_w * stride_w
    bh = jnp.exp(h) * a_h * stride_h

    boxes = jnp.stack([bx, by, bw, bh], axis=-1).reshape(bs, -1, 4)
    return jnp.concatenate(
        [boxes, conf.reshape(bs, -1, 1), pcls.reshape(bs, -1, num_classes)],
        axis=-1)


if __name__ == "__main__":
    bs = 2
    num_classes = 4
    anchors = [(10.0, 13.0), (16.0, 30.0), (33.0, 23.0)]
    num_anchors = len(anchors)
    bbox_attrs = 5 + num_classes
    in_h = in_w = 16
    img_size = (128, 128)

    key = jax.random.PRNGKey(0)
    x = jax.random.normal(
        key, (bs, num_anchors * bbox_attrs, in_h, in_w), dtype=jnp.float32)

    fwd = make_yolo_decode(anchors, num_classes, img_size, bs, in_h, in_w)
    out = jax.block_until_ready(fwd(x))

    ref = yolo_decode_reference(x, anchors, num_classes, img_size)
    assert out.shape == (bs, num_anchors * in_h * in_w, bbox_attrs), out.shape
    # Tolerance covers the EUP reciprocal path for sigmoid (with a Newton
    # refinement the observed error is typically << 1e-4).
    assert jnp.allclose(out, ref, atol=2e-3, rtol=1e-3), \
        float(jnp.max(jnp.abs(out - ref)))

    print("KERNEL_OK")
</pallas_src>

<mosaic_0001>
module attributes {stable_mosaic.version = 11 : i64} {
  func.func @_decode_kernel(%arg0: i32, %arg1: memref<3x9x1xf32, #tpu.memory_space<vmem>>, %arg2: memref<9x1xf32, #tpu.memory_space<vmem>>, %arg3: memref<9x128xf32, #tpu.memory_space<vmem>>, %arg4: memref<2x3x9x128xf32, #tpu.memory_space<vmem>>, %arg5: memref<2x3x128x9xf32, #tpu.memory_space<vmem>>) attributes {dimension_semantics = [#tpu.dimension_semantics<parallel>], iteration_bounds = array<i64: 2>, scalar_prefetch = 0 : i64, scratch_operands = 0 : i64, tpu.core_type = #tpu.core_type<tc>, window_params = [{pipeline_mode = #tpu.pipeline_mode<synchronous>, transform_indices = @transform_0, window_bounds = array<i64: 3, 9, 1>}, {pipeline_mode = #tpu.pipeline_mode<synchronous>, transform_indices = @transform_1, window_bounds = array<i64: 9, 1>}, {transform_indices = @transform_2, window_bounds = array<i64: 9, 128>}, {transform_indices = @transform_3, window_bounds = array<i64: 2, 3, 9, 128>}, {transform_indices = @transform_4, window_bounds = array<i64: 2, 3, 128, 9>}]} {
    %c0 = arith.constant 0 : index
    %c0_0 = arith.constant 0 : index
    %c0_1 = arith.constant 0 : index
    %c0_2 = arith.constant 0 : index
    %0 = vector.load %arg4[%c0, %c0_0, %c0_1, %c0_2] : memref<2x3x9x128xf32, #tpu.memory_space<vmem>>, vector<2x3x9x128xf32>
    %1 = math.exp %0 : vector<2x3x9x128xf32>
    %cst = arith.constant 1.000000e+00 : f32
    %2 = vector.broadcast %cst : f32 to vector<2x3x9x128xf32>
    %3 = arith.addf %2, %1 : vector<2x3x9x128xf32>
    %4 = tpu.reciprocal %3 {approx = true} : vector<2x3x9x128xf32> -> vector<2x3x9x128xf32>
    %5 = arith.mulf %3, %4 : vector<2x3x9x128xf32>
    %cst_3 = arith.constant 2.000000e+00 : f32
    %6 = vector.broadcast %cst_3 : f32 to vector<2x3x9x128xf32>
    %7 = arith.subf %6, %5 : vector<2x3x9x128xf32>
    %8 = arith.mulf %4, %7 : vector<2x3x9x128xf32>
    %cst_4 = arith.constant 3.000000e+01 : f32
    %9 = vector.broadcast %cst_4 : f32 to vector<2x3x9x128xf32>
    %10 = arith.cmpf ogt, %0, %9 : vector<2x3x9x128xf32>
    %11 = arith.mulf %1, %8 : vector<2x3x9x128xf32>
    %cst_5 = arith.constant 1.000000e+00 : f32
    %12 = vector.broadcast %cst_5 : f32 to vector<2x3x9x128xf32>
    %13 = arith.select %10, %12, %11 : vector<2x3x9x128xi1>, vector<2x3x9x128xf32>
    %c0_6 = arith.constant 0 : index
    %c0_7 = arith.constant 0 : index
    %14 = vector.load %arg2[%c0_6, %c0_7] : memref<9x1xf32, #tpu.memory_space<vmem>>, vector<9x1xf32>
    %cst_8 = arith.constant 0.000000e+00 : f32
    %15 = vector.broadcast %cst_8 : f32 to vector<9x1xf32>
    %16 = arith.cmpf one, %14, %15 : vector<9x1xf32>
    %17 = vector.shape_cast %16 : vector<9x1xi1> to vector<1x1x9x1xi1>
    %18 = vector.shape_cast %17 : vector<1x1x9x1xi1> to vector<1x1x9x1xi1>
    %19 = vector.broadcast %18 : vector<1x1x9x1xi1> to vector<2x3x9x128xi1>
    %20 = arith.select %19, %1, %13 : vector<2x3x9x128xi1>, vector<2x3x9x128xf32>
    %c0_9 = arith.constant 0 : index
    %c0_10 = arith.constant 0 : index
    %c0_11 = arith.constant 0 : index
    %21 = vector.load %arg1[%c0_9, %c0_10, %c0_11] : memref<3x9x1xf32, #tpu.memory_space<vmem>>, vector<3x9x1xf32>
    %22 = vector.shape_cast %21 : vector<3x9x1xf32> to vector<1x3x9x1xf32>
    %23 = vector.broadcast %22 : vector<1x3x9x1xf32> to vector<2x3x9x128xf32>
    %24 = arith.mulf %20, %23 : vector<2x3x9x128xf32>
    %c0_12 = arith.constant 0 : index
    %c0_13 = arith.constant 0 : index
    %25 = vector.load %arg3[%c0_12, %c0_13] : memref<9x128xf32, #tpu.memory_space<vmem>>, vector<9x128xf32>
    %26 = vector.shape_cast %25 : vector<9x128xf32> to vector<1x1x9x128xf32>
    %27 = vector.broadcast %26 : vector<1x1x9x128xf32> to vector<2x3x9x128xf32>
    %28 = arith.addf %24, %27 : vector<2x3x9x128xf32>
    %29 = tpu.transpose %28, [0, 1, 3, 2] : vector<2x3x9x128xf32> -> vector<2x3x128x9xf32>
    %c0_14 = arith.constant 0 : index
    %c0_15 = arith.constant 0 : index
    %c0_16 = arith.constant 0 : index
    %c0_17 = arith.constant 0 : index
    %30 = vector.load %arg5[%c0_14, %c0_15, %c0_16, %c0_17] : memref<2x3x128x9xf32, #tpu.memory_space<vmem>>, vector<2x3x128x9xf32>
    tpu.vector_store %arg5[%c0_14, %c0_15, %c0_16, %c0_17], %29 {strides = array<i32>} : memref<2x3x128x9xf32, #tpu.memory_space<vmem>>, vector<2x3x128x9xf32>,
    return
  }
  func.func @transform_0(%arg0: i32) -> (i32, i32, i32) {
    %c0_i32 = arith.constant 0 : i32
    %c0_i32_0 = arith.constant 0 : i32
    %c0_i32_1 = arith.constant 0 : i32
    %c0_i32_2 = arith.constant 0 : i32
    return %c0_i32, %c0_i32_0, %c0_i32_1 : i32, i32, i32
  }
  func.func @transform_1(%arg0: i32) -> (i32, i32) {
    %c0_i32 = arith.constant 0 : i32
    %c0_i32_0 = arith.constant 0 : i32
    %c0_i32_1 = arith.constant 0 : i32
    return %c0_i32, %c0_i32_0 : i32, i32
  }
  func.func @transform_2(%arg0: i32) -> (i32, i32) {
    %c0_i32 = arith.constant 0 : i32
    %c0_i32_0 = arith.constant 0 : i32
    return %c0_i32, %arg0 : i32, i32
  }
  func.func @transform_3(%arg0: i32) -> (i32, i32, i32, i32) {
    %c0_i32 = arith.constant 0 : i32
    %c0_i32_0 = arith.constant 0 : i32
    %c0_i32_1 = arith.constant 0 : i32
    %c0_i32_2 = arith.constant 0 : i32
    return %c0_i32, %c0_i32_0, %c0_i32_1, %arg0 : i32, i32, i32, i32
  }
  func.func @transform_4(%arg0: i32) -> (i32, i32, i32, i32) {
    %c0_i32 = arith.constant 0 : i32
    %c0_i32_0 = arith.constant 0 : i32
    %c0_i32_1 = arith.constant 0 : i32
    %c0_i32_2 = arith.constant 0 : i32
    return %c0_i32, %c0_i32_0, %arg0, %c0_i32_1 : i32, i32, i32, i32
  }
}

</mosaic_0001>

<bundles_post_ra>
// kernel: forward.1
= control target key start
LH: loop header
LB: loop body
LE: loop exit
PB: predicated region body
PF: predicated region fallthrough
CT: control target
= control target key end

     0   :  { %s1477_s15 = smov 0   ;;  %s1479_s16 = smov 0   ;;  %s2123_s0 = inlined_call_operand.vmem [shape: f32[3,9,1], index: 0, kind: input, shape index: {}]   ;;  %s2124_s1 = inlined_call_operand.vmem [shape: f32[9,1], index: 1, kind: input, shape index: {}]   ;;  %s2125_s2 = inlined_call_operand.vmem [shape: f32[9,256], index: 2, kind: input, shape index: {}]   ;;  %s2126_s3 = inlined_call_operand.vmem [shape: f32[2,3,9,256], index: 3, kind: input, shape index: {}]   ;;  %s2127_s4 = inlined_call_operand.vmem [shape: f32[2,3,256,9], index: 4, kind: output, shape index: {}]  }
   0x1   :  { %s1481_s17 = smov 0  }
   0x2 LB: > { %s1334_s18 = sadd.s32 4294967295, %s1449_s17   ;;  %s1494_s19 = sadd.s32 1, %s1449_s17   ;;  %s1449_s17 = sphi %s1481_s17, %s2132_s17   ;;  %s1445_s16 = sphi %s1479_s16, %s2131_s16   ;;  %s1441_s15 = sphi %s1477_s15, %s2130_s15  }
   0x3   : > { %s60_s20 = ssub.s32 %s1449_s17, %s1494_s19  ;;  %s63_s21 = sadd.s32 1, %s1445_s16 }
   0x4   : > { %p61_p0 = scmp.eq.s32.totalorder %s60_s20, 0  ;;  %p70_p1 = scmp.ne.s32.totalorder %s1445_s16, %s1441_s15 }
   0x5   : > { %p71_p2 = scmp.eq.s32.totalorder %s1449_s17, 0  ;;  %p126_p3 = scmp.eq.s32.totalorder %s1334_s18, 1 }
   0x6   : > { %s1505_s22 = scalar_select %p61_p0, %s1445_s16, %s63_s21  }
   0x7   : > { %p1507_p4 = por %p71_p2, %p70_p1  ;;  %p1511_p5 = por %p126_p3, %p70_p1 }
   0x8   : > { %p1337_p6 = scmp.ge.s32.totalorder %s1449_s17, 2 }
   0xa   : > { %154 = sbr.rel (%p1337_p6) target bundleno = 34 (0x22), region = 24 }
  0x11   : > { %157 = sbr.rel (!%p1507_p4) target bundleno = 24 (0x18), region = 28  ;;  %s159_s25 = sand.u32 (%p1507_p4), 1, %s1445_s16  }
  0x12   : > { %s1339_s26 = sshll.u32 (%p1507_p4), %s1449_s17, 3  ;;  %s1338_s27 = sshll.u32 (%p1507_p4), %s159_s25, 4 }
  0x13   : > { %s163_s30 = scalar_lea.vmem (%p1507_p4), %s2125_s2, %s1339_s26  ;;  %s161_s5 = scalar_lea.vmem (%p1507_p4), [#allocation2], %s1338_s27 }
  0x14   : > { %v193_v0 = vld [vmem:[%s163_s30] sm:$0xff] (%p1507_p4)  ;;  %v195_v1 = vld [vmem:[%s163_s30 + $0x10] sm:$0xff] (%p1507_p4) }
  0x15   : > { %194 = vst [vmem:[%s161_s5] sm:$0xff] (%p1507_p4), %v193_v0  ;;  %196 = vst [vmem:[%s161_s5 + $0x8] sm:$0xff] (%p1507_p4), %v195_v1 }
  0x18 PF: > { %202 = sbr.rel (!%p1507_p4) target bundleno = 34 (0x22), region = 66  ;;  %s204_s6 = sand.u32 (%p1507_p4), 1, %s1445_s16  }
  0x19   : > { %s1340_s7 = sshll.u32 (%p1507_p4), %s1449_s17, 3  ;;  %s1348_s8 = smul.u32 (%p1507_p4), 96, %s204_s6 }
  0x1a   : > { %s208_s11 = scalar_lea.vmem (%p1507_p4), %s2126_s3, %s1340_s7 }
  0x1b   : > { %v258_v2 = vld [vmem:[%s208_s11] sm:$0xff] (%p1507_p4)  ;;  %v260_v3 = vld [vmem:[%s208_s11 + $0x10] sm:$0xff] (%p1507_p4)  ;;  %s206_s12 = scalar_lea.vmem (%p1507_p4), [#allocation3], %s1348_s8 }
  0x1c   : > { %v262_v4 = vld [vmem:[%s208_s11 + $0x20] sm:$0xff] (%p1507_p4)  ;;  %v264_v5 = vld [vmem:[%s208_s11 + $0x30] sm:$0xff] (%p1507_p4)  ;;  %259 = vst [vmem:[%s206_s12] sm:$0xff] (%p1507_p4), %v258_v2  ;;  %261 = vst [vmem:[%s206_s12 + $0x8] sm:$0xff] (%p1507_p4), %v260_v3 }
  0x1d   : > { %v266_v6 = vld [vmem:[%s208_s11 + $0x40] sm:$0xff] (%p1507_p4)  ;;  %v268_v7 = vld [vmem:[%s208_s11 + $0x50] sm:$0xff] (%p1507_p4)  ;;  %263 = vst [vmem:[%s206_s12 + $0x10] sm:$0xff] (%p1507_p4), %v262_v4  ;;  %265 = vst [vmem:[%s206_s12 + $0x18] sm:$0xff] (%p1507_p4), %v264_v5 }
  0x1e   : > { %267 = vst [vmem:[%s206_s12 + $0x20] sm:$0xff] (%p1507_p4), %v266_v6  ;;  %269 = vst [vmem:[%s206_s12 + $0x28] sm:$0xff] (%p1507_p4), %v268_v7  ;;  %v270_v8 = vld [vmem:[%s208_s11 + $0x60] sm:$0xff] (%p1507_p4)  ;;  %v272_v9 = vld [vmem:[%s208_s11 + $0x70] sm:$0xff] (%p1507_p4) }
  0x1f   : > { %v274_v10 = vld [vmem:[%s208_s11 + $0x80] sm:$0xff]  ;;  %271 = vst [vmem:[%s206_s12 + $0x30] sm:$0xff] %v270_v8  ;;  %273 = vst [vmem:[%s206_s12 + $0x38] sm:$0xff] %v272_v9  ;;  %v276_v11 = vld [vmem:[%s208_s11 + $0x90] sm:$0xff] }
  0x20   : > { %275 = vst [vmem:[%s206_s12 + $0x40] sm:$0xff] %v274_v10  ;;  %v278_v12 = vld [vmem:[%s208_s11 + $0xa0] sm:$0xff]  ;;  %v280_v13 = vld [vmem:[%s208_s11 + $0xb0] sm:$0xff]  ;;  %277 = vst [vmem:[%s206_s12 + $0x48] sm:$0xff] %v276_v11 }
  0x21   : > { %279 = vst [vmem:[%s206_s12 + $0x50] sm:$0xff] %v278_v12  ;;  %281 = vst [vmem:[%s206_s12 + $0x58] sm:$0xff] %v280_v13 }
  0x22 PF: > { %p1341_p7 = scmp.ge.s32.totalorder %s1449_s17, 1  ;;  %p286_p8 = scmp.lt.s32.totalorder %s1449_s17, 3 }
  0x24   : > { %p287_p9 = pnand %p1341_p7, %p286_p8 }
  0x25   : > { %v487_v14 = vld [vmem:[%s2123_s0] sm:$0xff] (!%p287_p9)  ;;  %v1451_v16 = vmov (!%p287_p9), 0   ;;  %v462_v17 = vld [vmem:[%s2124_s1 + $0x8] sm:$0x1] (!%p287_p9)  ;;  %v490_v21 = vld [vmem:[%s2123_s0 + $0x18] sm:$0x1] (!%p287_p9) }
  0x26   : > { %290 = sbr.rel (%p287_p9) target bundleno = 507 (0x1fb), region = 104  ;;  %v461_v15 = vld [vmem:[%s2124_s1] sm:$0xff] (!%p287_p9)  ;;  %1378 = vset.pattern.permute.xlu1 (!%p287_p9), %v1451_v16  ;;  %1377 = vset.pattern.permute.xlu0 (!%p287_p9), %v1451_v16  ;;  %vm464_vm1 = vcmp.ne.f32.partialorder (!%p287_p9), %v462_v17, 0.0  ;;  %v488_v19 = vld [vmem:[%s2123_s0 + $0x8] sm:$0x1] (!%p287_p9)  ;;  %v489_v22 = vld [vmem:[%s2123_s0 + $0x10] sm:$0xff] (!%p287_p9) }
  0x27   : > { %vm463_vm0 = vcmp.ne.f32.partialorder (!%p287_p9), %v461_v15, 0.0  ;;  %495 = vperm.xlu1 (!%p287_p9), %1378, %v487_v14   ;;  %v466_v20 = vsel (!%p287_p9), %vm464_vm1, 1, %v1451_v16  ;;  %v492_v23 = vld [vmem:[%s2123_s0 + $0x28] sm:$0x1] (!%p287_p9)  ;;  %v491_v24 = vld [vmem:[%s2123_s0 + $0x20] sm:$0xff] (!%p287_p9)  ;;  %s1557_s10 = sand.u32 (!%p287_p9), 1, %s1441_s15  }
  0x28   : > { %v465_v18 = vsel (!%p287_p9), %vm463_vm0, 1, %v1451_v16  ;;  %s1349_s11 = smul.u32 (!%p287_p9), 96, %s1557_s10  ;;  %s1342_s15 = sshll.u32 (!%p287_p9), %s1557_s10, 4  ;;  %vm741_vm0 = vcmask (!%p287_p9), 72704  }
  0x29   : > { %468 = vperm.xlu0 (!%p287_p9), %1377, %v465_v18   ;;  %s295_s13 = scalar_lea.vmem (!%p287_p9), [#allocation2], %s1342_s15  ;;  %s1350_s14 = smul.u32 (!%p287_p9), 768, %s1557_s10 }
  0x2a   : > { %s1560_s12 = scalar_lea.vmem (!%p287_p9), [#allocation3], %s1349_s11 }
  0x2b   : > { %500 = vperm.xlu1 (!%p287_p9), %1378, %v488_v19   ;;  %v1563_v25 = vld [vmem:[%s1560_s12 + $0x8] sm:$0x1] (!%p287_p9)  ;;  %v1566_v26 = vld [vmem:[%s1560_s12] sm:$0xff] (!%p287_p9)  ;;  %v1573_v29 = vld [vmem:[%s1560_s12 + $0x50] sm:$0xff] (!%p287_p9)  ;;  %s1718_s20 = scalar_lea.vmem (!%p287_p9), [#allocation4], %s1350_s14 }
  0x2c   : > { %v1569_v27 = vld [vmem:[%s1560_s12 + $0x40] sm:$0xff] (!%p287_p9)  ;;  %v343_v28 = vmul.f32 (!%p287_p9), 1.442695, %v1563_v25  ;;  %v341_v30 = vmul.f32 (!%p287_p9), 1.442695, %v1566_v26  ;;  %v1577_v31 = vld [vmem:[%s1560_s12 + $0x30] sm:$0xff] (!%p287_p9) }
  0x2d   : > { %471 = vperm.xlu0 %1377, %v466_v20   ;;  %v1580_v32 = vld [vmem:[%s1560_s12 + $0x38] sm:$0x1]  ;;  %v357_v33 = vmul.f32 1.442695, %v1569_v27  ;;  %v361_v35 = vmul.f32 1.442695, %v1573_v29 }
  0x2e   : > { %v1584_v34 = vld [vmem:[%s1560_s12 + $0x18] sm:$0x1]  ;;  %1379 = vpow2.f32 %v343_v28  ;;  %v1588_v36 = vld [vmem:[%s1560_s12 + $0x48] sm:$0x1]  ;;  %v353_v37 = vmul.f32 1.442695, %v1577_v31 }
  0x2f   : > { %510 = vperm.xlu1 %1378, %v490_v21   ;;  %v355_v38 = vmul.f32 1.442695, %v1580_v32  ;;  %1381 = vpow2.f32 %v341_v30  ;;  %v1593_v39 = vld [vmem:[%s1560_s12 + $0x58] sm:$0x1]  ;;  %v347_v40 = vmul.f32 1.442695, %v1584_v34 }
  0x30   : > { %v1597_v41 = vld [vmem:[%s1560_s12 + $0x10] sm:$0xff]  ;;  %1383 = vpow2.f32 %v357_v33  ;;  %v359_v42 = vmul.f32 1.442695, %v1588_v36  ;;  %v363_v43 = vmul.f32 1.442695, %v1593_v39  ;;  %vm426_vm2 = vcmp.gt.f32.partialorder %v1563_v25, 30.0 }
  0x31   : > { %505 = vperm.xlu0 %1377, %v489_v22   ;;  %1385 = vpow2.f32 %v361_v35  ;;  %v345_v44 = vmul.f32 1.442695, %v1597_v41  ;;  %vm425_vm3 = vcmp.gt.f32.partialorder %v1566_v26, 30.0  ;;  %vm433_vm4 = vcmp.gt.f32.partialorder %v1569_v27, 30.0  ;;  %s1347_s21 = sshll.u32 (%p1511_p5), %s1334_s18, 7 }
  0x32   : > { %1387 = vpow2.f32 %v353_v37  ;;  %vm435_vm5 = vcmp.gt.f32.partialorder %v1573_v29, 30.0  ;;  %vm431_vm6 = vcmp.gt.f32.partialorder %v1577_v31, 30.0  ;;  %vm432_vm7 = vcmp.gt.f32.partialorder %v1580_v32, 30.0  ;;  %s1922_s24 = scalar_lea.vmem (%p1511_p5), %s2127_s4, %s1347_s21 }
  0x33   : > { %520 = vperm.xlu1 %1378, %v492_v23   ;;  %1389 = vpow2.f32 %v355_v38  ;;  %vm428_vm8 = vcmp.gt.f32.partialorder %v1584_v34, 30.0  ;;  %vm434_vm9 = vcmp.gt.f32.partialorder %v1588_v36, 30.0  ;;  %vm427_vm10 = vcmp.gt.f32.partialorder %v1597_v41, 30.0  ;;  %v536_v34 = vld [vmem:[%s295_s13 + $0x8] sm:$0x1] }
  0x34   : > { %1391 = vpow2.f32 %v347_v40  ;;  %vm436_vm12 = vcmp.gt.f32.partialorder %v1593_v39, 30.0 }
  0x35   : > { %515 = vperm.xlu0 %1377, %v491_v24   ;;  %1393 = vpow2.f32 %v359_v42 }
  0x36   : > { %1395 = vpow2.f32 %v363_v43 }
  0x37   : > { %1397 = vpow2.f32 %v345_v44 }
  0x38   : > { %v1602_v45 = vpop.eup %1379 }
  0x39   : > { %v1604_v46 = vpop.eup %1381  ;;  %v366_v49 = vadd.f32 1.0, %v1602_v45 }
  0x3a   : > { %v1606_v47 = vpop.eup %1383  ;;  %v365_v51 = vadd.f32 1.0, %v1604_v46 }
  0x3b   : > { %v1608_v48 = vpop.eup %1385  ;;  %v373_v53 = vadd.f32 1.0, %v1606_v47  ;;  %1399 = vrcp.f32 %v366_v49 }
  0x3c   : > { %v1611_v50 = vpop.eup %1387  ;;  %v375_v55 = vadd.f32 1.0, %v1608_v48  ;;  %1401 = vrcp.f32 %v365_v51 }
  0x3d   : > { %v1614_v52 = vpop.eup %1389  ;;  %v371_v57 = vadd.f32 1.0, %v1611_v50  ;;  %1403 = vrcp.f32 %v373_v53 }
  0x3e   : > { %v1617_v54 = vpop.eup %1391  ;;  %v372_v59 = vadd.f32 1.0, %v1614_v52  ;;  %1405 = vrcp.f32 %v375_v55 }
  0x3f   : > { %v1620_v56 = vpop.eup %1393  ;;  %v368_v61 = vadd.f32 1.0, %v1617_v54  ;;  %1407 = vrcp.f32 %v371_v57 }
  0x40   : > { %v1623_v58 = vpop.eup %1395  ;;  %v374_v62 = vadd.f32 1.0, %v1620_v56  ;;  %1409 = vrcp.f32 %v372_v59 }
  0x41   : > { %v1626_v60 = vpop.eup %1397  ;;  %v376_v63 = vadd.f32 1.0, %v1623_v58  ;;  %1411 = vrcp.f32 %v368_v61 }
  0x42   : > { %v367_v0 = vadd.f32 1.0, %v1626_v60  ;;  %1413 = vrcp.f32 %v374_v62 }
  0x43   : > { %1415 = vrcp.f32 %v376_v63 }
  0x44   : > { %1417 = vrcp.f32 %v367_v0 }
  0x45   : > { %v1400_v1 = vpop.eup %1399 }
  0x46   : > { %v1402_v2 = vpop.eup %1401  ;;  %v390_v15 = vmul.f32 %v1400_v1, %v366_v49 }
  0x47   : > { %v1404_v3 = vpop.eup %1403  ;;  %v389_v8 = vmul.f32 %v1402_v2, %v365_v51 }
  0x48   : > { %v1406_v4 = vpop.eup %1405  ;;  %v397_v9 = vmul.f32 %v1404_v3, %v373_v53  ;;  %v402_v28 = vsub.f32 2.0, %v390_v15 }
  0x49   : > { %v1408_v5 = vpop.eup %1407  ;;  %v399_v11 = vmul.f32 %v1406_v4, %v375_v55  ;;  %v401_v18 = vsub.f32 2.0, %v389_v8 }
  0x4a   : > { %v1410_v6 = vpop.eup %1409  ;;  %v395_v12 = vmul.f32 %v1408_v5, %v371_v57  ;;  %v409_v19 = vsub.f32 2.0, %v397_v9  ;;  %v414_v49 = vmul.f32 %v1400_v1, %v402_v28 }
  0x4b   : > { %v1412_v7 = vpop.eup %1411  ;;  %v396_v16 = vmul.f32 %v1410_v6, %v372_v59  ;;  %v411_v21 = vsub.f32 2.0, %v399_v11  ;;  %v413_v35 = vmul.f32 %v1402_v2, %v401_v18 }
  0x4c   : > { %v1414_v10 = vpop.eup %1413  ;;  %v407_v22 = vsub.f32 2.0, %v395_v12  ;;  %v392_v23 = vmul.f32 %v1412_v7, %v368_v61  ;;  %v421_v37 = vmul.f32 %v1404_v3, %v409_v19  ;;  %v438_v1 = vmul.f32 %v1602_v45, %v414_v49  ;;  %v1667_v12 = vld [vmem:[%s295_s13] sm:$0xff] }
  0x4d   : > { %v1416_v13 = vpop.eup %1415  ;;  %v398_v17 = vmul.f32 %v1414_v10, %v374_v62  ;;  %v408_v30 = vsub.f32 2.0, %v396_v16  ;;  %v423_v40 = vmul.f32 %v1406_v4, %v411_v21  ;;  %v437_v55 = vmul.f32 %v1604_v46, %v413_v35 }
  0x4e   : > { %v1418_v14 = vpop.eup %1417  ;;  %v400_v20 = vmul.f32 %v1416_v13, %v376_v63  ;;  %v419_v42 = vmul.f32 %v1408_v5, %v407_v22  ;;  %v404_v43 = vsub.f32 2.0, %v392_v23  ;;  %v445_v57 = vmul.f32 %v1606_v47, %v421_v37  ;;  %v334_v37 = vld [vmem:[%s1560_s12 + $0x28] sm:$0x1] }
  0x4f   : > { %v391_v24 = vmul.f32 %v1418_v14, %v367_v0  ;;  %v410_v33 = vsub.f32 2.0, %v398_v17  ;;  %v420_v51 = vmul.f32 %v1410_v6, %v408_v30  ;;  %v447_v61 = vmul.f32 %v1608_v48, %v423_v40  ;;  %v333_v17 = vld [vmem:[%s1560_s12 + $0x20] sm:$0xff] }
  0x50   : > { %v412_v38 = vsub.f32 2.0, %v400_v20  ;;  %v443_v62 = vmul.f32 %v1611_v50, %v419_v42  ;;  %v416_v63 = vmul.f32 %v1412_v7, %v404_v43  ;;  %v449_v5 = vsel %vm425_vm3, 1.0, %v437_v55 }
  0x51   : > { %v403_v44 = vsub.f32 2.0, %v391_v24  ;;  %v422_v53 = vmul.f32 %v1414_v10, %v410_v33  ;;  %v444_v2 = vmul.f32 %v1614_v52, %v420_v51  ;;  %v457_v29 = vsel %vm433_vm4, 1.0, %v445_v57 }
  0x52   : > { %v424_v59 = vmul.f32 %v1416_v13, %v412_v38  ;;  %v459_v7 = vsel %vm435_vm5, 1.0, %v447_v61  ;;  %v455_v8 = vsel %vm431_vm6, 1.0, %v443_v62  ;;  %v440_v9 = vmul.f32 %v1617_v54, %v416_v63 }
  0x53   : > { %v415_v0 = vmul.f32 %v1418_v14, %v403_v44  ;;  %v446_v4 = vmul.f32 %v1620_v56, %v422_v53  ;;  %v450_v26 = vsel %vm426_vm2, 1.0, %v438_v1  ;;  %v456_v27 = vsel %vm432_vm7, 1.0, %v444_v2 }
  0x54   : > { %v448_v6 = vmul.f32 %v1623_v58, %v424_v59  ;;  %v452_v36 = vsel %vm428_vm8, 1.0, %v440_v9  ;;  %v349_v23 = vmul.f32 1.442695, %v333_v17  ;;  %v351_v49 = vmul.f32 1.442695, %v334_v37 }
  0x55   : > { %v439_v10 = vmul.f32 %v1626_v60, %v415_v0  ;;  %v458_v39 = vsel %vm434_vm9, 1.0, %v446_v4  ;;  %vm429_vm14 = vcmp.gt.f32.partialorder %v333_v17, 30.0  ;;  %vm430_vm15 = vcmp.gt.f32.partialorder %v334_v37, 30.0 }
  0x56   : > { %v460_v16 = vsel %vm436_vm12, 1.0, %v448_v6  ;;  %1419 = vpow2.f32 %v349_v23 }
  0x57   : > { %v451_v19 = vsel %vm427_vm10, 1.0, %v439_v10  ;;  %1421 = vpow2.f32 %v351_v49 }
  0x60   : > { %v1420_v61 = vpop.eup %1419 }
  0x61   : > { %v369_v62 = vadd.f32 1.0, %v1420_v61  ;;  %v1422_v63 = vpop.eup %1421 }
  0x62   : > { %v370_v0 = vadd.f32 1.0, %v1422_v63 }
  0x63   : > { %1423 = vrcp.f32 %v369_v62 }
  0x64   : > { %1425 = vrcp.f32 %v370_v0 }
  0x6d   : > { %v1424_v1 = vpop.eup %1423 }
  0x6e   : > { %v393_v2 = vmul.f32 %v1424_v1, %v369_v62 }
  0xa6   : > { %v496_v3 = vpop.permute.xlu1 %495 }
  0xa8   : > { %v1652_v31 = vpop.permute.xlu0 %468 }
  0xa9   : > { %vm473_vm11 = vcmp.eq.s32.totalorder %v1652_v31, 1 }
  0xaa   : > { %v475_v11 = vsel %vm473_vm11, %v1604_v46, %v449_v5  ;;  %v483_v13 = vsel %vm473_vm11, %v1606_v47, %v457_v29  ;;  %v501_v14 = vpop.permute.xlu1 %500  ;;  %v485_v32 = vsel %vm473_vm11, %v1608_v48, %v459_v7  ;;  %v481_v46 = vsel %vm473_vm11, %v1611_v50, %v455_v8 }
  0xab   : > { %v523_v25 = vmul.f32 %v496_v3, %v475_v11  ;;  %v529_v18 = vmul.f32 %v496_v3, %v481_v46  ;;  %v1426_v3 = vpop.eup %1425  ;;  %v405_v5 = vsub.f32 2.0, %v393_v2 }
  0xac   : > { %v1680_v15 = vpop.permute.xlu0 %471  ;;  %v394_v4 = vmul.f32 %v1426_v3, %v370_v0 }
  0xad   : > { %vm474_vm13 = vcmp.eq.s32.totalorder %v1680_v15, 1  ;;  %v537_v47 = vadd.f32 %v1667_v12, %v523_v25  ;;  %v417_v6 = vmul.f32 %v1424_v1, %v405_v5 }
  0xae   : > { %v476_v48 = vsel %vm474_vm13, %v1602_v45, %v450_v26  ;;  %v482_v50 = vsel %vm474_vm13, %v1614_v52, %v456_v27  ;;  %v484_v20 = vsel %vm474_vm13, %v1620_v56, %v458_v39  ;;  %v511_v21 = vpop.permute.xlu1 %510  ;;  %v486_v41 = vsel %vm474_vm13, %v1623_v58, %v460_v16 }
  0xaf   : > { %549 = vxpose.xlu0.b32.start [1/2] (short) %v537_v47, 128  ;;  %v524_v22 = vmul.f32 %v501_v14, %v476_v48  ;;  %v543_v45 = vadd.f32 %v1667_v12, %v529_v18  ;;  %v478_v52 = vsel %vm474_vm13, %v1617_v54, %v452_v36  ;;  %v532_v24 = vmul.f32 %v511_v21, %v484_v20 }
  0xb0   : > { %v506_v28 = vpop.permute.xlu0 %505  ;;  %v477_v56 = vsel %vm473_vm11, %v1626_v60, %v451_v19  ;;  %v530_v30 = vmul.f32 %v501_v14, %v482_v50  ;;  %v526_v42 = vmul.f32 %v511_v21, %v478_v52  ;;  %v406_v29 = vsub.f32 2.0, %v394_v4 }
  0xb1   : > { %v525_v33 = vmul.f32 %v506_v28, %v477_v56  ;;  %v531_v35 = vmul.f32 %v506_v28, %v483_v13  ;;  %v538_v38 = vadd.f32 %v536_v34, %v524_v22  ;;  %v546_v58 = vadd.f32 %v536_v34, %v532_v24 }
  0xb2   : > { %v544_v40 = vadd.f32 %v536_v34, %v530_v30  ;;  %v521_v44 = vpop.permute.xlu1 %520  ;;  %v540_v57 = vadd.f32 %v536_v34, %v526_v42  ;;  %v418_v7 = vmul.f32 %v1426_v3, %v406_v29  ;;  %v441_v8 = vmul.f32 %v1420_v61, %v417_v6 }
  0xb3   : > { %v545_v43 = vadd.f32 %v1667_v12, %v531_v35  ;;  %550 = vxpose.xlu0.b32.end [2/2] (short) %v538_v38, 128  ;;  %v539_v54 = vadd.f32 %v1667_v12, %v525_v33  ;;  %v534_v51 = vmul.f32 %v521_v44, %v486_v41 }
  0xb4   : > { %v516_v53 = vpop.permute.xlu0 %515  ;;  %v442_v9 = vmul.f32 %v1422_v63, %v418_v7  ;;  %v453_v10 = vsel %vm429_vm14, 1.0, %v441_v8 }
  0xb5   : > { %v533_v55 = vmul.f32 %v516_v53, %v485_v32  ;;  %581 = vxpose.xlu1.b32.start [1/2] (short) %v539_v54, 128  ;;  %v548_v60 = vadd.f32 %v536_v34, %v534_v51  ;;  %v479_v26 = vsel %vm473_vm11, %v1420_v61, %v453_v10 }
  0xb6   : > { %v454_v27 = vsel %vm430_vm15, 1.0, %v442_v9  ;;  %v527_v11 = vmul.f32 %v516_v53, %v479_v26 }
  0xb7   : > { %v547_v59 = vadd.f32 %v1667_v12, %v533_v55  ;;  %v480_v13 = vsel %vm474_vm13, %v1422_v63, %v454_v27 }
  0xb8   : > { %v528_v14 = vmul.f32 %v521_v44, %v480_v13  ;;  %v541_v39 = vadd.f32 %v1667_v12, %v527_v11 }
  0xb9   : > { %582 = vxpose.xlu1.b32.end [2/2] (short) %v540_v57, 128 }
  0xba   : > { %v542_v25 = vadd.f32 %v536_v34, %v528_v14 }
  0xec   : > { %613 = vxpose.xlu0.b32.start [1/2] (short) %v541_v39, 128 }
  0xf0   : > { %614 = vxpose.xlu0.b32.end [2/2] (short) %v542_v25, 128 }
  0xf2   : > { %645 = vxpose.xlu1.b32.start [1/2] (short) %v543_v45, 128 }
  0xf6   : > { %646 = vxpose.xlu1.b32.end [2/2] (short) %v544_v40, 128 }
 0x129   : > { %677 = vxpose.xlu0.b32.start [1/2] (short) %v545_v43, 128 }
 0x12d   : > { %678 = vxpose.xlu0.b32.end [2/2] (short) %v546_v58, 128 }
 0x12f   : > { %709 = vxpose.xlu1.b32.start [1/2] (short) %v547_v59, 128  ;;  %v565_v31 = vpop.trf.xlu0 }
 0x130   : > { %742 = vst.msk [vmem:[%s1718_s20] sm:$0xff] %vm741_vm0, %v565_v31 }
 0x133   : > { %710 = vxpose.xlu1.b32.end [2/2] (short) %v548_v60, 128  ;;  %v566_v12 = vpop.trf.xlu0 }
 0x134   : > { %743 = vst.msk [vmem:[%s1718_s20 + $0x8] sm:$0xff] %vm741_vm0, %v566_v12 }
 0x135   : > { %v597_v32 = vpop.trf.xlu1 }
 0x136   : > { %758 = vst.msk [vmem:[%s1718_s20 + $0x80] sm:$0xff] %vm741_vm0, %v597_v32 }
 0x137   : > { %v567_v46 = vpop.trf.xlu0 }
 0x138   : > { %744 = vst.msk [vmem:[%s1718_s20 + $0x10] sm:$0xff] %vm741_vm0, %v567_v46 }
 0x139   : > { %v598_v15 = vpop.trf.xlu1 }
 0x13a   : > { %759 = vst.msk [vmem:[%s1718_s20 + $0x88] sm:$0xff] %vm741_vm0, %v598_v15 }
 0x13b   : > { %v568_v16 = vpop.trf.xlu0 }
 0x13c   : > { %745 = vst.msk [vmem:[%s1718_s20 + $0x18] sm:$0xff] %vm741_vm0, %v568_v16 }
 0x13d   : > { %v599_v17 = vpop.trf.xlu1 }
 0x13e   : > { %760 = vst.msk [vmem:[%s1718_s20 + $0x90] sm:$0xff] %vm741_vm0, %v599_v17 }
 0x13f   : > { %v569_v18 = vpop.trf.xlu0 }
 0x140   : > { %746 = vst.msk [vmem:[%s1718_s20 + $0x20] sm:$0xff] %vm741_vm0, %v569_v18 }
 0x141   : > { %v600_v36 = vpop.trf.xlu1 }
 0x142   : > { %761 = vst.msk [vmem:[%s1718_s20 + $0x98] sm:$0xff] %vm741_vm0, %v600_v36 }
 0x143   : > { %v570_v47 = vpop.trf.xlu0 }
 0x144   : > { %747 = vst.msk [vmem:[%s1718_s20 + $0x28] sm:$0xff] %vm741_vm0, %v570_v47 }
 0x145   : > { %v601_v19 = vpop.trf.xlu1 }
 0x146   : > { %762 = vst.msk [vmem:[%s1718_s20 + $0xa0] sm:$0xff] %vm741_vm0, %v601_v19 }
 0x147   : > { %v571_v48 = vpop.trf.xlu0 }
 0x148   : > { %748 = vst.msk [vmem:[%s1718_s20 + $0x30] sm:$0xff] %vm741_vm0, %v571_v48 }
 0x149   : > { %v602_v50 = vpop.trf.xlu1 }
 0x14a   : > { %763 = vst.msk [vmem:[%s1718_s20 + $0xa8] sm:$0xff] %vm741_vm0, %v602_v50 }
 0x14b   : > { %v572_v20 = vpop.trf.xlu0 }
 0x14c   : > { %749 = vst.msk [vmem:[%s1718_s20 + $0x38] sm:$0xff] %vm741_vm0, %v572_v20 }
 0x14d   : > { %v603_v34 = vpop.trf.xlu1 }
 0x14e   : > { %764 = vst.msk [vmem:[%s1718_s20 + $0xb0] sm:$0xff] %vm741_vm0, %v603_v34 }
 0x14f   : > { %v573_v21 = vpop.trf.xlu0 }
 0x150   : > { %750 = vst.msk [vmem:[%s1718_s20 + $0x40] sm:$0xff] %vm741_vm0, %v573_v21 }
 0x151   : > { %v604_v41 = vpop.trf.xlu1 }
 0x152   : > { %765 = vst.msk [vmem:[%s1718_s20 + $0xb8] sm:$0xff] %vm741_vm0, %v604_v41 }
 0x153   : > { %v574_v22 = vpop.trf.xlu0 }
 0x154   : > { %751 = vst.msk [vmem:[%s1718_s20 + $0x48] sm:$0xff] %vm741_vm0, %v574_v22 }
 0x155   : > { %v605_v23 = vpop.trf.xlu1 }
 0x156   : > { %766 = vst.msk [vmem:[%s1718_s20 + $0xc0] sm:$0xff] %vm741_vm0, %v605_v23 }
 0x157   : > { %v575_v45 = vpop.trf.xlu0 }
 0x158   : > { %752 = vst.msk [vmem:[%s1718_s20 + $0x50] sm:$0xff] %vm741_vm0, %v575_v45 }
 0x159   : > { %v606_v52 = vpop.trf.xlu1 }
 0x15a   : > { %767 = vst.msk [vmem:[%s1718_s20 + $0xc8] sm:$0xff] %vm741_vm0, %v606_v52 }
 0x15b   : > { %v576_v24 = vpop.trf.xlu0 }
 0x15c   : > { %753 = vst.msk [vmem:[%s1718_s20 + $0x58] sm:$0xff] %vm741_vm0, %v576_v24 }
 0x15d   : > { %v607_v28 = vpop.trf.xlu1 }
 0x15e   : > { %768 = vst.msk [vmem:[%s1718_s20 + $0xd0] sm:$0xff] %vm741_vm0, %v607_v28 }
 0x15f   : > { %v577_v56 = vpop.trf.xlu0 }
 0x160   : > { %754 = vst.msk [vmem:[%s1718_s20 + $0x60] sm:$0xff] %vm741_vm0, %v577_v56 }
 0x161   : > { %v608_v30 = vpop.trf.xlu1 }
 0x162   : > { %769 = vst.msk [vmem:[%s1718_s20 + $0xd8] sm:$0xff] %vm741_vm0, %v608_v30 }
 0x163   : > { %v578_v33 = vpop.trf.xlu0 }
 0x164   : > { %755 = vst.msk [vmem:[%s1718_s20 + $0x68] sm:$0xff] %vm741_vm0, %v578_v33 }
 0x165   : > { %v609_v35 = vpop.trf.xlu1 }
 0x166   : > { %770 = vst.msk [vmem:[%s1718_s20 + $0xe0] sm:$0xff] %vm741_vm0, %v609_v35 }
 0x167   : > { %v579_v37 = vpop.trf.xlu0 }
 0x168   : > { %756 = vst.msk [vmem:[%s1718_s20 + $0x70] sm:$0xff] %vm741_vm0, %v579_v37 }
 0x169   : > { %v610_v38 = vpop.trf.xlu1 }
 0x16a   : > { %771 = vst.msk [vmem:[%s1718_s20 + $0xe8] sm:$0xff] %vm741_vm0, %v610_v38 }
 0x16b   : > { %v580_v58 = vpop.trf.xlu0 }
 0x16c   : > { %757 = vst.msk [vmem:[%s1718_s20 + $0x78] sm:$0xff] %vm741_vm0, %v580_v58 }
 0x16d   : > { %v611_v40 = vpop.trf.xlu1 }
 0x16e   : > { %772 = vst.msk [vmem:[%s1718_s20 + $0xf0] sm:$0xff] %vm741_vm0, %v611_v40 }
 0x16f   : > { %v629_v42 = vpop.trf.xlu0 }
 0x170   : > { %774 = vst.msk [vmem:[%s1718_s20 + $0x100] sm:$0xff] %vm741_vm0, %v629_v42 }
 0x171   : > { %v612_v43 = vpop.trf.xlu1 }
 0x172   : > { %773 = vst.msk [vmem:[%s1718_s20 + $0xf8] sm:$0xff] %vm741_vm0, %v612_v43  ;;  %v1065_v43 = vld [vmem:[%s1718_s20] sm:$0xff] (%p1511_p5) }
 0x173   : > { %v630_v44 = vpop.trf.xlu0  ;;  %1066 = vst [vmem:[%s1922_s24] sm:$0xff] (%p1511_p5), %v1065_v43 }
 0x174   : > { %775 = vst.msk [vmem:[%s1718_s20 + $0x108] sm:$0xff] %vm741_vm0, %v630_v44  ;;  %v1067_v44 = vld [vmem:[%s1718_s20 + $0x8] sm:$0xff] (%p1511_p5) }
 0x175   : > { %v661_v54 = vpop.trf.xlu1  ;;  %1068 = vst [vmem:[%s1922_s24 + $0x8] sm:$0xff] (%p1511_p5), %v1067_v44 }
 0x176   : > { %790 = vst.msk [vmem:[%s1718_s20 + $0x180] sm:$0xff] %vm741_vm0, %v661_v54  ;;  %v1069_v54 = vld [vmem:[%s1718_s20 + $0x10] sm:$0xff] (%p1511_p5) }
 0x177   : > { %v631_v49 = vpop.trf.xlu0  ;;  %1070 = vst [vmem:[%s1922_s24 + $0x10] sm:$0xff] (%p1511_p5), %v1069_v54 }
 0x178   : > { %776 = vst.msk [vmem:[%s1718_s20 + $0x110] sm:$0xff] %vm741_vm0, %v631_v49  ;;  %v1071_v49 = vld [vmem:[%s1718_s20 + $0x18] sm:$0xff] (%p1511_p5) }
 0x179   : > { %v662_v51 = vpop.trf.xlu1  ;;  %1072 = vst [vmem:[%s1922_s24 + $0x18] sm:$0xff] (%p1511_p5), %v1071_v49 }
 0x17a   : > { %791 = vst.msk [vmem:[%s1718_s20 + $0x188] sm:$0xff] %vm741_vm0, %v662_v51  ;;  %v1073_v51 = vld [vmem:[%s1718_s20 + $0x20] sm:$0xff] (%p1511_p5) }
 0x17b   : > { %v632_v53 = vpop.trf.xlu0  ;;  %1074 = vst [vmem:[%s1922_s24 + $0x20] sm:$0xff] (%p1511_p5), %v1073_v51 }
 0x17c   : > { %777 = vst.msk [vmem:[%s1718_s20 + $0x118] sm:$0xff] %vm741_vm0, %v632_v53  ;;  %v1075_v53 = vld [vmem:[%s1718_s20 + $0x28] sm:$0xff] (%p1511_p5) }
 0x17d   : > { %v663_v55 = vpop.trf.xlu1  ;;  %1076 = vst [vmem:[%s1922_s24 + $0x28] sm:$0xff] (%p1511_p5), %v1075_v53 }
 0x17e   : > { %792 = vst.msk [vmem:[%s1718_s20 + $0x190] sm:$0xff] %vm741_vm0, %v663_v55  ;;  %v1077_v55 = vld [vmem:[%s1718_s20 + $0x30] sm:$0xff] (%p1511_p5) }
 0x17f   : > { %v633_v60 = vpop.trf.xlu0  ;;  %1078 = vst [vmem:[%s1922_s24 + $0x30] sm:$0xff] (%p1511_p5), %v1077_v55 }
 0x180   : > { %778 = vst.msk [vmem:[%s1718_s20 + $0x120] sm:$0xff] %vm741_vm0, %v633_v60  ;;  %v1079_v60 = vld [vmem:[%s1718_s20 + $0x38] sm:$0xff] (%p1511_p5) }
 0x181   : > { %v664_v57 = vpop.trf.xlu1  ;;  %1080 = vst [vmem:[%s1922_s24 + $0x38] sm:$0xff] (%p1511_p5), %v1079_v60 }
 0x182   : > { %793 = vst.msk [vmem:[%s1718_s20 + $0x198] sm:$0xff] %vm741_vm0, %v664_v57  ;;  %v1081_v57 = vld [vmem:[%s1718_s20 + $0x40] sm:$0xff] (%p1511_p5) }
 0x183   : > { %v634_v59 = vpop.trf.xlu0  ;;  %1082 = vst [vmem:[%s1922_s24 + $0x40] sm:$0xff] (%p1511_p5), %v1081_v57 }
 0x184   : > { %779 = vst.msk [vmem:[%s1718_s20 + $0x128] sm:$0xff] %vm741_vm0, %v634_v59  ;;  %v1083_v59 = vld [vmem:[%s1718_s20 + $0x48] sm:$0xff] (%p1511_p5) }
 0x185   : > { %v665_v61 = vpop.trf.xlu1  ;;  %1084 = vst [vmem:[%s1922_s24 + $0x48] sm:$0xff] (%p1511_p5), %v1083_v59 }
 0x186   : > { %794 = vst.msk [vmem:[%s1718_s20 + $0x1a0] sm:$0xff] %vm741_vm0, %v665_v61  ;;  %v1085_v61 = vld [vmem:[%s1718_s20 + $0x50] sm:$0xff] (%p1511_p5) }
 0x187   : > { %v635_v62 = vpop.trf.xlu0  ;;  %1086 = vst [vmem:[%s1922_s24 + $0x50] sm:$0xff] (%p1511_p5), %v1085_v61 }
 0x188   : > { %780 = vst.msk [vmem:[%s1718_s20 + $0x130] sm:$0xff] %vm741_vm0, %v635_v62  ;;  %v1087_v62 = vld [vmem:[%s1718_s20 + $0x58] sm:$0xff] (%p1511_p5) }
 0x189   : > { %v666_v63 = vpop.trf.xlu1  ;;  %1088 = vst [vmem:[%s1922_s24 + $0x58] sm:$0xff] (%p1511_p5), %v1087_v62 }
 0x18a   : > { %795 = vst.msk [vmem:[%s1718_s20 + $0x1a8] sm:$0xff] %vm741_vm0, %v666_v63  ;;  %v1089_v63 = vld [vmem:[%s1718_s20 + $0x60] sm:$0xff] (%p1511_p5) }
 0x18b   : > { %v636_v0 = vpop.trf.xlu0  ;;  %1090 = vst [vmem:[%s1922_s24 + $0x60] sm:$0xff] (%p1511_p5), %v1089_v63 }
 0x18c   : > { %781 = vst.msk [vmem:[%s1718_s20 + $0x138] sm:$0xff] %vm741_vm0, %v636_v0  ;;  %v1091_v0 = vld [vmem:[%s1718_s20 + $0x68] sm:$0xff] (%p1511_p5) }
 0x18d   : > { %v667_v1 = vpop.trf.xlu1  ;;  %1092 = vst [vmem:[%s1922_s24 + $0x68] sm:$0xff] (%p1511_p5), %v1091_v0 }
 0x18e   : > { %796 = vst.msk [vmem:[%s1718_s20 + $0x1b0] sm:$0xff] %vm741_vm0, %v667_v1  ;;  %v1093_v1 = vld [vmem:[%s1718_s20 + $0x70] sm:$0xff] (%p1511_p5) }
 0x18f   : > { %v637_v2 = vpop.trf.xlu0  ;;  %1094 = vst [vmem:[%s1922_s24 + $0x70] sm:$0xff] (%p1511_p5), %v1093_v1 }
 0x190   : > { %782 = vst.msk [vmem:[%s1718_s20 + $0x140] sm:$0xff] %vm741_vm0, %v637_v2  ;;  %v1095_v2 = vld [vmem:[%s1718_s20 + $0x78] sm:$0xff] (%p1511_p5) }
 0x191   : > { %v668_v3 = vpop.trf.xlu1  ;;  %1096 = vst [vmem:[%s1922_s24 + $0x78] sm:$0xff] (%p1511_p5), %v1095_v2 }
 0x192   : > { %797 = vst.msk [vmem:[%s1718_s20 + $0x1b8] sm:$0xff] %vm741_vm0, %v668_v3  ;;  %v1097_v3 = vld [vmem:[%s1718_s20 + $0x80] sm:$0xff] (%p1511_p5) }
 0x193   : > { %v638_v4 = vpop.trf.xlu0  ;;  %1098 = vst [vmem:[%s1922_s24 + $0x100] sm:$0xff] (%p1511_p5), %v1097_v3 }
 0x194   : > { %783 = vst.msk [vmem:[%s1718_s20 + $0x148] sm:$0xff] %vm741_vm0, %v638_v4  ;;  %v1099_v4 = vld [vmem:[%s1718_s20 + $0x88] sm:$0xff] (%p1511_p5) }
 0x195   : > { %v669_v5 = vpop.trf.xlu1  ;;  %1100 = vst [vmem:[%s1922_s24 + $0x108] sm:$0xff] (%p1511_p5), %v1099_v4 }
 0x196   : > { %798 = vst.msk [vmem:[%s1718_s20 + $0x1c0] sm:$0xff] %vm741_vm0, %v669_v5  ;;  %v1101_v5 = vld [vmem:[%s1718_s20 + $0x90] sm:$0xff] (%p1511_p5) }
 0x197   : > { %v639_v29 = vpop.trf.xlu0  ;;  %1102 = vst [vmem:[%s1922_s24 + $0x110] sm:$0xff] (%p1511_p5), %v1101_v5 }
 0x198   : > { %784 = vst.msk [vmem:[%s1718_s20 + $0x150] sm:$0xff] %vm741_vm0, %v639_v29  ;;  %v1103_v29 = vld [vmem:[%s1718_s20 + $0x98] sm:$0xff] (%p1511_p5) }
 0x199   : > { %v670_v6 = vpop.trf.xlu1  ;;  %1104 = vst [vmem:[%s1922_s24 + $0x118] sm:$0xff] (%p1511_p5), %v1103_v29 }
 0x19a   : > { %799 = vst.msk [vmem:[%s1718_s20 + $0x1c8] sm:$0xff] %vm741_vm0, %v670_v6  ;;  %v1105_v6 = vld [vmem:[%s1718_s20 + $0xa0] sm:$0xff] (%p1511_p5) }
 0x19b   : > { %v640_v7 = vpop.trf.xlu0  ;;  %1106 = vst [vmem:[%s1922_s24 + $0x120] sm:$0xff] (%p1511_p5), %v1105_v6 }
 0x19c   : > { %785 = vst.msk [vmem:[%s1718_s20 + $0x158] sm:$0xff] %vm741_vm0, %v640_v7  ;;  %v1107_v7 = vld [vmem:[%s1718_s20 + $0xa8] sm:$0xff] (%p1511_p5) }
 0x19d   : > { %v671_v8 = vpop.trf.xlu1  ;;  %1108 = vst [vmem:[%s1922_s24 + $0x128] sm:$0xff] (%p1511_p5), %v1107_v7 }
 0x19e   : > { %800 = vst.msk [vmem:[%s1718_s20 + $0x1d0] sm:$0xff] %vm741_vm0, %v671_v8  ;;  %v1109_v8 = vld [vmem:[%s1718_s20 + $0xb0] sm:$0xff] (%p1511_p5) }
 0x19f   : > { %v641_v9 = vpop.trf.xlu0  ;;  %1110 = vst [vmem:[%s1922_s24 + $0x130] sm:$0xff] (%p1511_p5), %v1109_v8 }
 0x1a0   : > { %786 = vst.msk [vmem:[%s1718_s20 + $0x160] sm:$0xff] %vm741_vm0, %v641_v9  ;;  %v1111_v9 = vld [vmem:[%s1718_s20 + $0xb8] sm:$0xff] (%p1511_p5) }
 0x1a1   : > { %v672_v10 = vpop.trf.xlu1  ;;  %1112 = vst [vmem:[%s1922_s24 + $0x138] sm:$0xff] (%p1511_p5), %v1111_v9 }
 0x1a2   : > { %801 = vst.msk [vmem:[%s1718_s20 + $0x1d8] sm:$0xff] %vm741_vm0, %v672_v10  ;;  %v1113_v10 = vld [vmem:[%s1718_s20 + $0xc0] sm:$0xff] (%p1511_p5) }
 0x1a3   : > { %v642_v26 = vpop.trf.xlu0  ;;  %1114 = vst [vmem:[%s1922_s24 + $0x140] sm:$0xff] (%p1511_p5), %v1113_v10 }
 0x1a4   : > { %787 = vst.msk [vmem:[%s1718_s20 + $0x168] sm:$0xff] %vm741_vm0, %v642_v26  ;;  %v1115_v26 = vld [vmem:[%s1718_s20 + $0xc8] sm:$0xff] (%p1511_p5) }
 0x1a5   : > { %v673_v27 = vpop.trf.xlu1  ;;  %1116 = vst [vmem:[%s1922_s24 + $0x148] sm:$0xff] (%p1511_p5), %v1115_v26 }
 0x1a6   : > { %802 = vst.msk [vmem:[%s1718_s20 + $0x1e0] sm:$0xff] %vm741_vm0, %v673_v27  ;;  %v1117_v27 = vld [vmem:[%s1718_s20 + $0xd0] sm:$0xff] (%p1511_p5) }
 0x1a7   : > { %v643_v11 = vpop.trf.xlu0  ;;  %1118 = vst [vmem:[%s1922_s24 + $0x150] sm:$0xff] (%p1511_p5), %v1117_v27 }
 0x1a8   : > { %788 = vst.msk [vmem:[%s1718_s20 + $0x170] sm:$0xff] %vm741_vm0, %v643_v11  ;;  %v1119_v11 = vld [vmem:[%s1718_s20 + $0xd8] sm:$0xff] (%p1511_p5) }
 0x1a9   : > { %v674_v13 = vpop.trf.xlu1  ;;  %1120 = vst [vmem:[%s1922_s24 + $0x158] sm:$0xff] (%p1511_p5), %v1119_v11 }
 0x1aa   : > { %803 = vst.msk [vmem:[%s1718_s20 + $0x1e8] sm:$0xff] %vm741_vm0, %v674_v13  ;;  %v1121_v13 = vld [vmem:[%s1718_s20 + $0xe0] sm:$0xff] (%p1511_p5) }
 0x1ab   : > { %v644_v14 = vpop.trf.xlu0  ;;  %1122 = vst [vmem:[%s1922_s24 + $0x160] sm:$0xff] (%p1511_p5), %v1121_v13 }
 0x1ac   : > { %789 = vst.msk [vmem:[%s1718_s20 + $0x178] sm:$0xff] %vm741_vm0, %v644_v14  ;;  %v1123_v14 = vld [vmem:[%s1718_s20 + $0xe8] sm:$0xff] (%p1511_p5) }
 0x1ad   : > { %v675_v39 = vpop.trf.xlu1  ;;  %1124 = vst [vmem:[%s1922_s24 + $0x168] sm:$0xff] (%p1511_p5), %v1123_v14 }
 0x1ae   : > { %804 = vst.msk [vmem:[%s1718_s20 + $0x1f0] sm:$0xff] %vm741_vm0, %v675_v39  ;;  %v1125_v39 = vld [vmem:[%s1718_s20 + $0xf0] sm:$0xff] (%p1511_p5) }
 0x1af   : > { %v693_v25 = vpop.trf.xlu0  ;;  %1126 = vst [vmem:[%s1922_s24 + $0x170] sm:$0xff] (%p1511_p5), %v1125_v39 }
 0x1b0   : > { %806 = vst.msk [vmem:[%s1718_s20 + $0x200] sm:$0xff] %vm741_vm0, %v693_v25  ;;  %v1127_v25 = vld [vmem:[%s1718_s20 + $0xf8] sm:$0xff] (%p1511_p5) }
 0x1b1   : > { %v676_v31 = vpop.trf.xlu1  ;;  %1128 = vst [vmem:[%s1922_s24 + $0x178] sm:$0xff] (%p1511_p5), %v1127_v25 }
 0x1b2   : > { %805 = vst.msk [vmem:[%s1718_s20 + $0x1f8] sm:$0xff] %vm741_vm0, %v676_v31  ;;  %v1129_v31 = vld [vmem:[%s1718_s20 + $0x100] sm:$0xff] (%p1511_p5) }
 0x1b3   : > { %v694_v12 = vpop.trf.xlu0  ;;  %1130 = vst [vmem:[%s1922_s24 + $0x200] sm:$0xff] (%p1511_p5), %v1129_v31 }
 0x1b4   : > { %807 = vst.msk [vmem:[%s1718_s20 + $0x208] sm:$0xff] %vm741_vm0, %v694_v12  ;;  %v1131_v12 = vld [vmem:[%s1718_s20 + $0x108] sm:$0xff] (%p1511_p5) }
 0x1b5   : > { %v725_v32 = vpop.trf.xlu1  ;;  %1132 = vst [vmem:[%s1922_s24 + $0x208] sm:$0xff] (%p1511_p5), %v1131_v12 }
 0x1b6   : > { %822 = vst.msk [vmem:[%s1718_s20 + $0x280] sm:$0xff] %vm741_vm0, %v725_v32  ;;  %v1133_v32 = vld [vmem:[%s1718_s20 + $0x110] sm:$0xff] (%p1511_p5) }
 0x1b7   : > { %v695_v46 = vpop.trf.xlu0  ;;  %1134 = vst [vmem:[%s1922_s24 + $0x210] sm:$0xff] (%p1511_p5), %v1133_v32  ;;  %v1193_v43 = vld [vmem:[%s1718_s20 + $0x200] sm:$0xff] (%p1511_p5) }
 0x1b8   : > { %808 = vst.msk [vmem:[%s1718_s20 + $0x210] sm:$0xff] %vm741_vm0, %v695_v46  ;;  %v1135_v46 = vld [vmem:[%s1718_s20 + $0x118] sm:$0xff] (%p1511_p5)  ;;  %1194 = vst [vmem:[%s1922_s24 + $0x400] sm:$0xff] (%p1511_p5), %v1193_v43 }
 0x1b9   : > { %v726_v15 = vpop.trf.xlu1  ;;  %1136 = vst [vmem:[%s1922_s24 + $0x218] sm:$0xff] (%p1511_p5), %v1135_v46 }
 0x1ba   : > { %823 = vst.msk [vmem:[%s1718_s20 + $0x288] sm:$0xff] %vm741_vm0, %v726_v15  ;;  %v1137_v15 = vld [vmem:[%s1718_s20 + $0x120] sm:$0xff] (%p1511_p5) }
 0x1bb   : > { %v696_v16 = vpop.trf.xlu0  ;;  %1138 = vst [vmem:[%s1922_s24 + $0x220] sm:$0xff] (%p1511_p5), %v1137_v15  ;;  %v1195_v44 = vld [vmem:[%s1718_s20 + $0x208] sm:$0xff] (%p1511_p5) }
 0x1bc   : > { %809 = vst.msk [vmem:[%s1718_s20 + $0x218] sm:$0xff] %vm741_vm0, %v696_v16  ;;  %v1139_v16 = vld [vmem:[%s1718_s20 + $0x128] sm:$0xff] (%p1511_p5)  ;;  %1196 = vst [vmem:[%s1922_s24 + $0x408] sm:$0xff] (%p1511_p5), %v1195_v44 }
 0x1bd   : > { %v727_v17 = vpop.trf.xlu1  ;;  %1140 = vst [vmem:[%s1922_s24 + $0x228] sm:$0xff] (%p1511_p5), %v1139_v16  ;;  %v1225_v3 = vld [vmem:[%s1718_s20 + $0x280] sm:$0xff] (%p1511_p5) }
 0x1be   : > { %824 = vst.msk [vmem:[%s1718_s20 + $0x290] sm:$0xff] %vm741_vm0, %v727_v17  ;;  %v1141_v17 = vld [vmem:[%s1718_s20 + $0x130] sm:$0xff] (%p1511_p5)  ;;  %1226 = vst [vmem:[%s1922_s24 + $0x500] sm:$0xff] (%p1511_p5), %v1225_v3 }
 0x1bf   : > { %v697_v18 = vpop.trf.xlu0  ;;  %1142 = vst [vmem:[%s1922_s24 + $0x230] sm:$0xff] (%p1511_p5), %v1141_v17  ;;  %v1197_v54 = vld [vmem:[%s1718_s20 + $0x210] sm:$0xff] (%p1511_p5) }
 0x1c0   : > { %810 = vst.msk [vmem:[%s1718_s20 + $0x220] sm:$0xff] %vm741_vm0, %v697_v18  ;;  %v1143_v18 = vld [vmem:[%s1718_s20 + $0x138] sm:$0xff] (%p1511_p5)  ;;  %1198 = vst [vmem:[%s1922_s24 + $0x410] sm:$0xff] (%p1511_p5), %v1197_v54 }
 0x1c1   : > { %v728_v36 = vpop.trf.xlu1  ;;  %1144 = vst [vmem:[%s1922_s24 + $0x238] sm:$0xff] (%p1511_p5), %v1143_v18  ;;  %v1227_v4 = vld [vmem:[%s1718_s20 + $0x288] sm:$0xff] (%p1511_p5) }
 0x1c2   : > { %825 = vst.msk [vmem:[%s1718_s20 + $0x298] sm:$0xff] %vm741_vm0, %v728_v36  ;;  %v1145_v36 = vld [vmem:[%s1718_s20 + $0x140] sm:$0xff] (%p1511_p5)  ;;  %1228 = vst [vmem:[%s1922_s24 + $0x508] sm:$0xff] (%p1511_p5), %v1227_v4 }
 0x1c3   : > { %v698_v47 = vpop.trf.xlu0  ;;  %1146 = vst [vmem:[%s1922_s24 + $0x240] sm:$0xff] (%p1511_p5), %v1145_v36  ;;  %v1199_v49 = vld [vmem:[%s1718_s20 + $0x218] sm:$0xff] (%p1511_p5) }
 0x1c4   : > { %811 = vst.msk [vmem:[%s1718_s20 + $0x228] sm:$0xff] %vm741_vm0, %v698_v47  ;;  %v1147_v47 = vld [vmem:[%s1718_s20 + $0x148] sm:$0xff] (%p1511_p5)  ;;  %1200 = vst [vmem:[%s1922_s24 + $0x418] sm:$0xff] (%p1511_p5), %v1199_v49 }
 0x1c5   : > { %v729_v19 = vpop.trf.xlu1  ;;  %1148 = vst [vmem:[%s1922_s24 + $0x248] sm:$0xff] (%p1511_p5), %v1147_v47  ;;  %v1229_v5 = vld [vmem:[%s1718_s20 + $0x290] sm:$0xff] (%p1511_p5) }
 0x1c6   : > { %826 = vst.msk [vmem:[%s1718_s20 + $0x2a0] sm:$0xff] %vm741_vm0, %v729_v19  ;;  %v1149_v19 = vld [vmem:[%s1718_s20 + $0x150] sm:$0xff] (%p1511_p5)  ;;  %1230 = vst [vmem:[%s1922_s24 + $0x510] sm:$0xff] (%p1511_p5), %v1229_v5 }
 0x1c7   : > { %v699_v48 = vpop.trf.xlu0  ;;  %1150 = vst [vmem:[%s1922_s24 + $0x250] sm:$0xff] (%p1511_p5), %v1149_v19  ;;  %v1201_v51 = vld [vmem:[%s1718_s20 + $0x220] sm:$0xff] (%p1511_p5) }
 0x1c8   : > { %812 = vst.msk [vmem:[%s1718_s20 + $0x230] sm:$0xff] %vm741_vm0, %v699_v48  ;;  %v1151_v48 = vld [vmem:[%s1718_s20 + $0x158] sm:$0xff] (%p1511_p5)  ;;  %1202 = vst [vmem:[%s1922_s24 + $0x420] sm:$0xff] (%p1511_p5), %v1201_v51 }
 0x1c9   : > { %v730_v50 = vpop.trf.xlu1  ;;  %1152 = vst [vmem:[%s1922_s24 + $0x258] sm:$0xff] (%p1511_p5), %v1151_v48  ;;  %v1231_v29 = vld [vmem:[%s1718_s20 + $0x298] sm:$0xff] (%p1511_p5) }
 0x1ca   : > { %827 = vst.msk [vmem:[%s1718_s20 + $0x2a8] sm:$0xff] %vm741_vm0, %v730_v50  ;;  %v1153_v50 = vld [vmem:[%s1718_s20 + $0x160] sm:$0xff] (%p1511_p5)  ;;  %1232 = vst [vmem:[%s1922_s24 + $0x518] sm:$0xff] (%p1511_p5), %v1231_v29 }
 0x1cb   : > { %v700_v20 = vpop.trf.xlu0  ;;  %1154 = vst [vmem:[%s1922_s24 + $0x260] sm:$0xff] (%p1511_p5), %v1153_v50  ;;  %v1203_v53 = vld [vmem:[%s1718_s20 + $0x228] sm:$0xff] (%p1511_p5) }
 0x1cc   : > { %813 = vst.msk [vmem:[%s1718_s20 + $0x238] sm:$0xff] %vm741_vm0, %v700_v20  ;;  %v1155_v20 = vld [vmem:[%s1718_s20 + $0x168] sm:$0xff] (%p1511_p5)  ;;  %1204 = vst [vmem:[%s1922_s24 + $0x428] sm:$0xff] (%p1511_p5), %v1203_v53 }
 0x1cd   : > { %v731_v34 = vpop.trf.xlu1  ;;  %1156 = vst [vmem:[%s1922_s24 + $0x268] sm:$0xff] (%p1511_p5), %v1155_v20  ;;  %v1233_v6 = vld [vmem:[%s1718_s20 + $0x2a0] sm:$0xff] (%p1511_p5) }
 0x1ce   : > { %828 = vst.msk [vmem:[%s1718_s20 + $0x2b0] sm:$0xff] %vm741_vm0, %v731_v34  ;;  %v1157_v34 = vld [vmem:[%s1718_s20 + $0x170] sm:$0xff] (%p1511_p5)  ;;  %1234 = vst [vmem:[%s1922_s24 + $0x520] sm:$0xff] (%p1511_p5), %v1233_v6 }
 0x1cf   : > { %v701_v21 = vpop.trf.xlu0  ;;  %1158 = vst [vmem:[%s1922_s24 + $0x270] sm:$0xff] (%p1511_p5), %v1157_v34  ;;  %v1205_v55 = vld [vmem:[%s1718_s20 + $0x230] sm:$0xff] (%p1511_p5) }
 0x1d0   : > { %814 = vst.msk [vmem:[%s1718_s20 + $0x240] sm:$0xff] %vm741_vm0, %v701_v21  ;;  %v1159_v21 = vld [vmem:[%s1718_s20 + $0x178] sm:$0xff] (%p1511_p5)  ;;  %1206 = vst [vmem:[%s1922_s24 + $0x430] sm:$0xff] (%p1511_p5), %v1205_v55 }
 0x1d1   : > { %v732_v41 = vpop.trf.xlu1  ;;  %1160 = vst [vmem:[%s1922_s24 + $0x278] sm:$0xff] (%p1511_p5), %v1159_v21  ;;  %v1235_v7 = vld [vmem:[%s1718_s20 + $0x2a8] sm:$0xff] (%p1511_p5) }
 0x1d2   : > { %829 = vst.msk [vmem:[%s1718_s20 + $0x2b8] sm:$0xff] %vm741_vm0, %v732_v41  ;;  %v1161_v41 = vld [vmem:[%s1718_s20 + $0x180] sm:$0xff] (%p1511_p5)  ;;  %1236 = vst [vmem:[%s1922_s24 + $0x528] sm:$0xff] (%p1511_p5), %v1235_v7 }
 0x1d3   : > { %v702_v22 = vpop.trf.xlu0  ;;  %1162 = vst [vmem:[%s1922_s24 + $0x300] sm:$0xff] (%p1511_p5), %v1161_v41  ;;  %v1207_v60 = vld [vmem:[%s1718_s20 + $0x238] sm:$0xff] (%p1511_p5) }
 0x1d4   : > { %815 = vst.msk [vmem:[%s1718_s20 + $0x248] sm:$0xff] %vm741_vm0, %v702_v22  ;;  %v1163_v22 = vld [vmem:[%s1718_s20 + $0x188] sm:$0xff] (%p1511_p5)  ;;  %1208 = vst [vmem:[%s1922_s24 + $0x438] sm:$0xff] (%p1511_p5), %v1207_v60 }
 0x1d5   : > { %v733_v23 = vpop.trf.xlu1  ;;  %1164 = vst [vmem:[%s1922_s24 + $0x308] sm:$0xff] (%p1511_p5), %v1163_v22  ;;  %v1237_v8 = vld [vmem:[%s1718_s20 + $0x2b0] sm:$0xff] (%p1511_p5) }
 0x1d6   : > { %830 = vst.msk [vmem:[%s1718_s20 + $0x2c0] sm:$0xff] %vm741_vm0, %v733_v23  ;;  %v1165_v23 = vld [vmem:[%s1718_s20 + $0x190] sm:$0xff] (%p1511_p5)  ;;  %1238 = vst [vmem:[%s1922_s24 + $0x530] sm:$0xff] (%p1511_p5), %v1237_v8 }
 0x1d7   : > { %v703_v45 = vpop.trf.xlu0  ;;  %1166 = vst [vmem:[%s1922_s24 + $0x310] sm:$0xff] (%p1511_p5), %v1165_v23  ;;  %v1209_v57 = vld [vmem:[%s1718_s20 + $0x240] sm:$0xff] (%p1511_p5) }
 0x1d8   : > { %816 = vst.msk [vmem:[%s1718_s20 + $0x250] sm:$0xff] %vm741_vm0, %v703_v45  ;;  %v1167_v45 = vld [vmem:[%s1718_s20 + $0x198] sm:$0xff] (%p1511_p5)  ;;  %1210 = vst [vmem:[%s1922_s24 + $0x440] sm:$0xff] (%p1511_p5), %v1209_v57 }
 0x1d9   : > { %v734_v52 = vpop.trf.xlu1  ;;  %1168 = vst [vmem:[%s1922_s24 + $0x318] sm:$0xff] (%p1511_p5), %v1167_v45  ;;  %v1239_v9 = vld [vmem:[%s1718_s20 + $0x2b8] sm:$0xff] (%p1511_p5) }
 0x1da   : > { %831 = vst.msk [vmem:[%s1718_s20 + $0x2c8] sm:$0xff] %vm741_vm0, %v734_v52  ;;  %v1169_v52 = vld [vmem:[%s1718_s20 + $0x1a0] sm:$0xff] (%p1511_p5)  ;;  %1240 = vst [vmem:[%s1922_s24 + $0x538] sm:$0xff] (%p1511_p5), %v1239_v9 }
 0x1db   : > { %v704_v24 = vpop.trf.xlu0  ;;  %1170 = vst [vmem:[%s1922_s24 + $0x320] sm:$0xff] (%p1511_p5), %v1169_v52  ;;  %v1211_v59 = vld [vmem:[%s1718_s20 + $0x248] sm:$0xff] (%p1511_p5) }
 0x1dc   : > { %817 = vst.msk [vmem:[%s1718_s20 + $0x258] sm:$0xff] %vm741_vm0, %v704_v24  ;;  %v1171_v24 = vld [vmem:[%s1718_s20 + $0x1a8] sm:$0xff] (%p1511_p5)  ;;  %1212 = vst [vmem:[%s1922_s24 + $0x448] sm:$0xff] (%p1511_p5), %v1211_v59 }
 0x1dd   : > { %v735_v28 = vpop.trf.xlu1  ;;  %1172 = vst [vmem:[%s1922_s24 + $0x328] sm:$0xff] (%p1511_p5), %v1171_v24  ;;  %v1241_v10 = vld [vmem:[%s1718_s20 + $0x2c0] sm:$0xff] (%p1511_p5) }
 0x1de   : > { %832 = vst.msk [vmem:[%s1718_s20 + $0x2d0] sm:$0xff] %vm741_vm0, %v735_v28  ;;  %v1173_v28 = vld [vmem:[%s1718_s20 + $0x1b0] sm:$0xff] (%p1511_p5)  ;;  %1242 = vst [vmem:[%s1922_s24 + $0x540] sm:$0xff] (%p1511_p5), %v1241_v10 }
 0x1df   : > { %v705_v56 = vpop.trf.xlu0  ;;  %1174 = vst [vmem:[%s1922_s24 + $0x330] sm:$0xff] (%p1511_p5), %v1173_v28  ;;  %v1213_v61 = vld [vmem:[%s1718_s20 + $0x250] sm:$0xff] (%p1511_p5) }
 0x1e0   : > { %818 = vst.msk [vmem:[%s1718_s20 + $0x260] sm:$0xff] %vm741_vm0, %v705_v56  ;;  %v1175_v56 = vld [vmem:[%s1718_s20 + $0x1b8] sm:$0xff] (%p1511_p5)  ;;  %1214 = vst [vmem:[%s1922_s24 + $0x450] sm:$0xff] (%p1511_p5), %v1213_v61 }
 0x1e1   : > { %v736_v30 = vpop.trf.xlu1  ;;  %1176 = vst [vmem:[%s1922_s24 + $0x338] sm:$0xff] (%p1511_p5), %v1175_v56  ;;  %v1243_v26 = vld [vmem:[%s1718_s20 + $0x2c8] sm:$0xff] (%p1511_p5) }
 0x1e2   : > { %833 = vst.msk [vmem:[%s1718_s20 + $0x2d8] sm:$0xff] %vm741_vm0, %v736_v30  ;;  %v1177_v30 = vld [vmem:[%s1718_s20 + $0x1c0] sm:$0xff] (%p1511_p5)  ;;  %1244 = vst [vmem:[%s1922_s24 + $0x548] sm:$0xff] (%p1511_p5), %v1243_v26 }
 0x1e3   : > { %v706_v33 = vpop.trf.xlu0  ;;  %1178 = vst [vmem:[%s1922_s24 + $0x340] sm:$0xff] (%p1511_p5), %v1177_v30  ;;  %v1215_v62 = vld [vmem:[%s1718_s20 + $0x258] sm:$0xff] (%p1511_p5) }
 0x1e4   : > { %819 = vst.msk [vmem:[%s1718_s20 + $0x268] sm:$0xff] %vm741_vm0, %v706_v33  ;;  %v1179_v33 = vld [vmem:[%s1718_s20 + $0x1c8] sm:$0xff] (%p1511_p5)  ;;  %1216 = vst [vmem:[%s1922_s24 + $0x458] sm:$0xff] (%p1511_p5), %v1215_v62 }
 0x1e5   : > { %v737_v35 = vpop.trf.xlu1  ;;  %1180 = vst [vmem:[%s1922_s24 + $0x348] sm:$0xff] (%p1511_p5), %v1179_v33  ;;  %v1245_v27 = vld [vmem:[%s1718_s20 + $0x2d0] sm:$0xff] (%p1511_p5) }
 0x1e6   : > { %834 = vst.msk [vmem:[%s1718_s20 + $0x2e0] sm:$0xff] %vm741_vm0, %v737_v35  ;;  %v1181_v35 = vld [vmem:[%s1718_s20 + $0x1d0] sm:$0xff] (%p1511_p5)  ;;  %1246 = vst [vmem:[%s1922_s24 + $0x550] sm:$0xff] (%p1511_p5), %v1245_v27 }
 0x1e7   : > { %v707_v37 = vpop.trf.xlu0  ;;  %1182 = vst [vmem:[%s1922_s24 + $0x350] sm:$0xff] (%p1511_p5), %v1181_v35  ;;  %v1217_v63 = vld [vmem:[%s1718_s20 + $0x260] sm:$0xff] (%p1511_p5) }
 0x1e8   : > { %820 = vst.msk [vmem:[%s1718_s20 + $0x270] sm:$0xff] %vm741_vm0, %v707_v37  ;;  %v1183_v37 = vld [vmem:[%s1718_s20 + $0x1d8] sm:$0xff] (%p1511_p5)  ;;  %1218 = vst [vmem:[%s1922_s24 + $0x460] sm:$0xff] (%p1511_p5), %v1217_v63 }
 0x1e9   : > { %v738_v38 = vpop.trf.xlu1  ;;  %1184 = vst [vmem:[%s1922_s24 + $0x358] sm:$0xff] (%p1511_p5), %v1183_v37  ;;  %v1247_v11 = vld [vmem:[%s1718_s20 + $0x2d8] sm:$0xff] (%p1511_p5) }
 0x1ea   : > { %835 = vst.msk [vmem:[%s1718_s20 + $0x2e8] sm:$0xff] %vm741_vm0, %v738_v38  ;;  %v1185_v38 = vld [vmem:[%s1718_s20 + $0x1e0] sm:$0xff] (%p1511_p5)  ;;  %1248 = vst [vmem:[%s1922_s24 + $0x558] sm:$0xff] (%p1511_p5), %v1247_v11 }
 0x1eb   : > { %v708_v58 = vpop.trf.xlu0  ;;  %1186 = vst [vmem:[%s1922_s24 + $0x360] sm:$0xff] (%p1511_p5), %v1185_v38  ;;  %v1219_v0 = vld [vmem:[%s1718_s20 + $0x268] sm:$0xff] (%p1511_p5) }
 0x1ec   : > { %821 = vst.msk [vmem:[%s1718_s20 + $0x278] sm:$0xff] %vm741_vm0, %v708_v58  ;;  %844 = sbr.rel (!%p1511_p5) target bundleno = 507 (0x1fb), region = 116  ;;  %v1187_v58 = vld [vmem:[%s1718_s20 + $0x1e8] sm:$0xff] (%p1511_p5)  ;;  %1220 = vst [vmem:[%s1922_s24 + $0x468] sm:$0xff] (%p1511_p5), %v1219_v0 }
 0x1ed   : > { %v739_v40 = vpop.trf.xlu1  ;;  %1188 = vst [vmem:[%s1922_s24 + $0x368] sm:$0xff] (%p1511_p5), %v1187_v58  ;;  %v1249_v13 = vld [vmem:[%s1718_s20 + $0x2e0] sm:$0xff] (%p1511_p5) }
 0x1ee   : > { %836 = vst.msk [vmem:[%s1718_s20 + $0x2f0] sm:$0xff] %vm741_vm0, %v739_v40  ;;  %v1189_v40 = vld [vmem:[%s1718_s20 + $0x1f0] sm:$0xff] (%p1511_p5)  ;;  %1250 = vst [vmem:[%s1922_s24 + $0x560] sm:$0xff] (%p1511_p5), %v1249_v13 }
 0x1ef   : > { %1190 = vst [vmem:[%s1922_s24 + $0x370] sm:$0xff] (%p1511_p5), %v1189_v40  ;;  %v1221_v1 = vld [vmem:[%s1718_s20 + $0x270] sm:$0xff] (%p1511_p5) }
 0x1f0   : > { %1222 = vst [vmem:[%s1922_s24 + $0x470] sm:$0xff] (%p1511_p5), %v1221_v1 }
 0x1f1   : > { %v740_v42 = vpop.trf.xlu1  ;;  %v1251_v14 = vld [vmem:[%s1718_s20 + $0x2e8] sm:$0xff] (%p1511_p5) }
 0x1f2   : > { %837 = vst.msk [vmem:[%s1718_s20 + $0x2f8] sm:$0xff] %vm741_vm0, %v740_v42  ;;  %v1191_v42 = vld [vmem:[%s1718_s20 + $0x1f8] sm:$0xff] (%p1511_p5)  ;;  %1252 = vst [vmem:[%s1922_s24 + $0x568] sm:$0xff] (%p1511_p5), %v1251_v14 }
 0x1f3   : > { %1192 = vst [vmem:[%s1922_s24 + $0x378] sm:$0xff] %v1191_v42  ;;  %v1223_v2 = vld [vmem:[%s1718_s20 + $0x278] sm:$0xff] }
 0x1f4   : > { %1224 = vst [vmem:[%s1922_s24 + $0x478] sm:$0xff] %v1223_v2 }
 0x1f5   : > { %v1253_v39 = vld [vmem:[%s1718_s20 + $0x2f0] sm:$0xff] }
 0x1f6   : > { %1254 = vst [vmem:[%s1922_s24 + $0x570] sm:$0xff] %v1253_v39 }
 0x1f9   : > { %v1255_v25 = vld [vmem:[%s1718_s20 + $0x2f8] sm:$0xff] }
 0x1fa   : > { %1256 = vst [vmem:[%s1922_s24 + $0x578] sm:$0xff] %v1255_v25 }
 0x1fb PF: > { %p11_p10 = scmp.ge.s32.totalorder %s1494_s19, 4   ;;  %s2130_s15 = smov %s1445_s16 }
 0x1fc   : > { %s2131_s16 = smov %s1505_s22  ;;  %s2132_s17 = smov %s1494_s19 }
 0x1fd   :  { %13 = sbr.rel (!%p11_p10) target bundleno = 2 (0x2), region = 193 }

</bundles_post_ra>
